<compile_context>
chip_gen: v6e
topology: v6e:2x2x1
jax: 0.10.0
libtpu: 0.0.40
codegen_flags: <defaults>
</compile_context>

<pallas_src>
import functools

import jax
import jax.numpy as jnp
from jax.experimental import pallas as pl
from jax.experimental.pallas import tpu as pltpu


def _round_up(x, m):
    return ((x + m - 1) // m) * m


def _sublane_multiple(dtype):
    # Packed sub-32-bit dtypes need 16 (bf16) / 32 (int8, fp8) sublanes per tile.
    itemsize = jnp.dtype(dtype).itemsize
    return max(8, 32 // itemsize)


def _lane_pad(n):
    return _round_up(n, 128)


def _fourier_input_kernel(pos_ref, bmat_ref, out_ref, *, d_in, n_freqs):
    # pos_ref : (TM, d_in)             VMEM
    # bmat_ref: (d_in, n_freqs)        VMEM, already scaled by 2*pi, f32
    # out_ref : (TM, d_in + 2*n_freqs) VMEM
    pos = pos_ref[...]                                       # (TM, d_in)

    # Tiny contraction pushed through the otherwise-idle MXU; K-underfill is
    # irrelevant when the MXU has 100% slack, and it frees VALU/XLU slots for
    # the sin/cos polynomials and the lane-masked stores.
    proj = jnp.dot(pos.astype(jnp.float32), bmat_ref[...],
                   preferred_element_type=jnp.float32)       # (TM, n_freqs) f32

    # Direct sub-slice stores instead of a concatenate: avoids the XLU lane
    # rotations and the extra (TM, d_out) VMEM temp of assembling a full block.
    out_ref[:, :d_in] = pos.astype(out_ref.dtype)
    out_ref[:, d_in:d_in + n_freqs] = jnp.sin(proj).astype(out_ref.dtype)
    out_ref[:, d_in + n_freqs:] = jnp.cos(proj).astype(out_ref.dtype)


def input_processing_positionfou(pos, bmat, *, fourier_encoding=True):
    """pos: (batch, seq, d_in); bmat: (d_in, n_freqs) Gaussian frequency matrix."""
    if not fourier_encoding:
        return pos

    batch, seq, d_in = pos.shape
    d_in_b, n_freqs = bmat.shape
    assert d_in_b == d_in

    M = batch * seq
    d_out = d_in + 2 * n_freqs
    itemsize = jnp.dtype(pos.dtype).itemsize

    # Row-tile size: big enough to swamp the ~0.35 us per-grid-step overhead,
    # rounded to the dtype's sublane multiple, capped at 8K rows so the lane-
    # padded working set stays well inside v7x's 64 MiB physical VMEM.
    sub = _sublane_multiple(pos.dtype)
    TM = min(8192, _round_up(M, sub))
    grid = (pl.cdiv(M, TM),)

    pos_flat = pos.reshape(M, d_in)
    bmat_scaled = ((2.0 * jnp.pi) * bmat).astype(jnp.float32)

    # VMEM budget (lane-padded): double-buffered pos + out blocks, plus f32
    # temporaries (proj / sin / cos) of one lane-tile width each.
    vmem_est = (
        2 * TM * _lane_pad(d_in) * itemsize          # pos blocks (double-buffered)
        + 2 * TM * _lane_pad(d_out) * itemsize       # out blocks (double-buffered)
        + 4 * TM * _lane_pad(max(n_freqs, d_in)) * 4 # proj / sin / cos / spill temps
        + 2 * _round_up(d_in, 8) * _lane_pad(n_freqs) * 4  # bmat blocks
    )
    vmem_limit = min(_round_up(int(vmem_est * 1.5) + (4 << 20), 1 << 20), 56 << 20)

    kernel = functools.partial(_fourier_input_kernel, d_in=d_in, n_freqs=n_freqs)

    cost = pl.CostEstimate(
        flops=2 * M * d_in * n_freqs,
        transcendentals=2 * M * n_freqs,
        bytes_accessed=(M * d_in + M * d_out) * itemsize + d_in * n_freqs * 4,
    )

    out_flat = pl.pallas_call(
        kernel,
        out_shape=jax.ShapeDtypeStruct((M, d_out), pos.dtype),
        grid_spec=pltpu.PrefetchScalarGridSpec(
            num_scalar_prefetch=0,
            grid=grid,
            in_specs=[
                pl.BlockSpec((TM, d_in), lambda i: (i, 0)),
                # Constant operand: same block every step, Pallas keeps it resident.
                pl.BlockSpec((d_in, n_freqs), lambda i: (0, 0)),
            ],
            out_specs=pl.BlockSpec((TM, d_out), lambda i: (i, 0)),
        ),
        compiler_params=pltpu.CompilerParams(
            # Independent M-tiles: shard across both TensorCores on v7x.
            dimension_semantics=("parallel",),
            vmem_limit_bytes=vmem_limit,
        ),
        cost_estimate=cost,
    )(pos_flat, bmat_scaled)

    return out_flat.reshape(batch, seq, d_out)


def _reference(pos, bmat):
    proj = jnp.einsum("bsd,df->bsf", pos, 2.0 * jnp.pi * bmat)
    enc = jnp.concatenate([jnp.sin(proj), jnp.cos(proj)], axis=-1)
    return jnp.concatenate([pos, enc], axis=-1)


if __name__ == "__main__":
    key = jax.random.PRNGKey(0)
    k_pos, k_b = jax.random.split(key)

    batch, seq, d_in, n_freqs = 2, 8, 3, 32
    pos = jax.random.uniform(k_pos, (batch, seq, d_in), dtype=jnp.float32)
    # Deterministic Gaussian frequency matrix of the fourier_module.
    bmat = jax.random.normal(k_b, (d_in, n_freqs), dtype=jnp.float32)

    out = input_processing_positionfou(pos, bmat, fourier_encoding=True)
    out = jax.block_until_ready(out)

    ref = _reference(pos, bmat)
    assert out.shape == (batch, seq, d_in + 2 * n_freqs)
    assert jnp.allclose(out, ref, atol=1e-5, rtol=1e-5)

    print("KERNEL_OK")
</pallas_src>

<mosaic_0001>
module attributes {stable_mosaic.version = 11 : i64} {
  func.func @_fourier_input_kernel(%arg0: i32, %arg1: memref<16x3xf32, #tpu.memory_space<vmem>>, %arg2: memref<3x32xf32, #tpu.memory_space<vmem>>, %arg3: memref<16x67xf32, #tpu.memory_space<vmem>>) attributes {dimension_semantics = [#tpu.dimension_semantics<parallel>], iteration_bounds = array<i64: 1>, scalar_prefetch = 0 : i64, scratch_operands = 0 : i64, tpu.core_type = #tpu.core_type<tc>, window_params = [{transform_indices = @transform_0, window_bounds = array<i64: 16, 3>}, {pipeline_mode = #tpu.pipeline_mode<synchronous>, transform_indices = @transform_1, window_bounds = array<i64: 3, 32>}, {transform_indices = @transform_2, window_bounds = array<i64: 16, 67>}]} {
    %c0 = arith.constant 0 : index
    %c0_0 = arith.constant 0 : index
    %0 = vector.load %arg1[%c0, %c0_0] : memref<16x3xf32, #tpu.memory_space<vmem>>, vector<16x3xf32>
    %c0_1 = arith.constant 0 : index
    %c0_2 = arith.constant 0 : index
    %1 = vector.load %arg2[%c0_1, %c0_2] : memref<3x32xf32, #tpu.memory_space<vmem>>, vector<3x32xf32>
    %cst = arith.constant dense<0.000000e+00> : vector<16x32xf32>
    %2 = tpu.matmul %0, %1, %cst {dimension_numbers = #tpu.dot_dimension_numbers<[1], [0], [0], [1], [0, 0, 1, 1], [], []>} : vector<16x3xf32>, vector<3x32xf32>, vector<16x32xf32> -> vector<16x32xf32>
    %c0_3 = arith.constant 0 : index
    %c0_4 = arith.constant 0 : index
    %3 = vector.load %arg3[%c0_3, %c0_4] : memref<16x67xf32, #tpu.memory_space<vmem>>, vector<16x3xf32>
    tpu.vector_store %arg3[%c0_3, %c0_4], %0 {strides = array<i32>} : memref<16x67xf32, #tpu.memory_space<vmem>>, vector<16x3xf32>,
    %4 = math.sin %2 : vector<16x32xf32>
    %c0_5 = arith.constant 0 : index
    %c3 = arith.constant 3 : index
    %5 = vector.load %arg3[%c0_5, %c3] : memref<16x67xf32, #tpu.memory_space<vmem>>, vector<16x32xf32>
    tpu.vector_store %arg3[%c0_5, %c3], %4 {strides = array<i32>} : memref<16x67xf32, #tpu.memory_space<vmem>>, vector<16x32xf32>,
    %6 = math.cos %2 : vector<16x32xf32>
    %c0_6 = arith.constant 0 : index
    %c35 = arith.constant 35 : index
    %7 = vector.load %arg3[%c0_6, %c35] : memref<16x67xf32, #tpu.memory_space<vmem>>, vector<16x32xf32>
    tpu.vector_store %arg3[%c0_6, %c35], %6 {strides = array<i32>} : memref<16x67xf32, #tpu.memory_space<vmem>>, vector<16x32xf32>,
    return
  }
  func.func @transform_0(%arg0: i32) -> (i32, i32) {
    %c0_i32 = arith.constant 0 : i32
    %c0_i32_0 = arith.constant 0 : i32
    return %arg0, %c0_i32 : i32, i32
  }
  func.func @transform_1(%arg0: i32) -> (i32, i32) {
    %c0_i32 = arith.constant 0 : i32
    %c0_i32_0 = arith.constant 0 : i32
    %c0_i32_1 = arith.constant 0 : i32
    return %c0_i32, %c0_i32_0 : i32, i32
  }
  func.func @transform_2(%arg0: i32) -> (i32, i32) {
    %c0_i32 = arith.constant 0 : i32
    %c0_i32_0 = arith.constant 0 : i32
    return %arg0, %c0_i32 : i32, i32
  }
}

</mosaic_0001>

<bundles_post_ra>
// kernel: tpu_custom_call.1
= control target key start
LH: loop header
LB: loop body
LE: loop exit
PB: predicated region body
PF: predicated region fallthrough
CT: control target
= control target key end

     0   :  { %vm22_vm0 = vcmask 1042432   ;;  %vm15_vm1 = vcmask 23552   ;;  %s750_s0 = inlined_call_operand.vmem [shape: f32[16,3], index: 0, kind: input, shape index: {}]   ;;  %s751_s1 = inlined_call_operand.vmem [shape: f32[3,32], index: 1, kind: input, shape index: {}]   ;;  %s752_s2 = inlined_call_operand.hbm [shape: f32[16,67], index: 2, kind: output, shape index: {}]  }
   0x1   :  { %v14_v0 = vld [vmem:[%s751_s1] sm:$0x7]  ;;  %v13_v2 = vld [vmem:[%s750_s0 + $0x8] sm:$0xff] }
   0x2   :  { %v12_v1 = vld [vmem:[%s750_s0] sm:$0xff]  ;;  %577 = vmatprep.subr.msk.mxu0 %vm22_vm0, %v14_v0  ;;  %102 = vst.msk [vmem:[#allocation2 + $0x8] sm:$0xff] %vm15_vm1, %v13_v2 }
   0x3   :  { %579 = vmatprep.mubr.msk.f32.mxu0 %vm15_vm1, %v12_v1  ;;  %101 = vst.msk [vmem:[#allocation2] sm:$0xff] %vm15_vm1, %v12_v1 }
   0x4   :  { %7 = vsyncpa [#allocation3], 0  ;;  %578 = vmatpush3.msk.msra.mxu0 %vm22_vm0, %v14_v0  ;;  %v631_v23 = vmov 683565275   ;;  %v632_v26 = vmov 2475754826  }
   0x5   :  { %580 = vmatmul.mubr.msk.f32.vlgmr.msra.gmra.mxu0 %vm15_vm1, %v13_v2  ;;  %v633_v28 = vmov 2131351028   ;;  %v634_v30 = vmov 2102212464   ;;  %v635_v32 = vmov 920167782  }
   0x6   :  { %v636_v39 = vmov 1326507024   ;;  %s637_s0 = smov 35   ;;  %s638_s1 = smov 3  }
   0x7   :  { %s639_s15 = smov [#allocation2]  }
   0x8   :  { %s544_s16 = sshll.u32 %s639_s15, 4  ;;  %s545_s16 = int_to_ptr.vmem [resolvable:$true] %s544_s16 }
   0x9   :  { %s609_s17 = scalar_lea.vmem %s545_s16, 256  ;;  %p614_p1 = scmp.lt.s32.totalorder %s545_s16, %s545_s16 }
   0xa   :  { %p610_p0 = scmp.ne.s32.totalorder %s545_s16, %s609_s17  ;;  %p615_p2 = scmp.lt.s32.totalorder %s609_s17, %s609_s17 }
   0xc   :  { %p616_p3 = por %p615_p2, %p614_p1 }
   0xe   :  { %p617_p4 = pnand %p616_p3, %p610_p0 }
  0xc5   :  { %v666_v3 = vpop.f32.mrf.mxu0 }
  0xc6   :  { %v207_v4 = vand.u32 2147483647, %v666_v3  ;;  %v210_v5 = vand.u32 2139095040, %v666_v3  ;;  %vm209_vm0 = vcmp.lt.s32.totalorder %v666_v3, 0 }
  0xc7   :  { %v670_v6 = vpop.f32.mrf.mxu0 }
  0xc8   :  { %v211_v7 = vshrl.u32 %v210_v5, 23  ;;  %v214_v8 = vand.u32 8388607, %v207_v4  ;;  %v106_v9 = vand.u32 2139095040, %v670_v6  ;;  %v103_v11 = vand.u32 2147483647, %v670_v6 }
  0xc9   :  { %vm725_vm1 = vcmp.le.f32.partialorder %v207_v4, 0.7853982 }
  0xca   :  { %v562_v10 = vadd.s32 4294967169, %v211_v7  ;;  %v107_v12 = vshrl.u32 %v106_v9, 23  ;;  %v215_v14 = vor.u32 8388608, %v214_v8  ;;  %v110_v16 = vand.u32 8388607, %v103_v11 }
  0xcc   :  { %v217_v13 = vadd.s32 1, %v562_v10  ;;  %v558_v15 = vadd.s32 4294967169, %v107_v12  ;;  %v678_v21 = vshll.u32 %v215_v14, 8  ;;  %v111_v25 = vor.u32 8388608, %v110_v16 }
  0xce   :  { %vm218_vm2 = vcmp.gt.s32.totalorder %v217_v13, 0  ;;  %v113_v18 = vadd.s32 1, %v558_v15  ;;  %v151_v58 = vshll.u32 %v111_v25, 8 }
  0xcf   :  { %v219_v17 = vsel %vm218_vm2, %v217_v13, 0  ;;  %vm105_vm2 = vcmp.lt.s32.totalorder %v670_v6, 0 }
  0xd0   :  { %v220_v19 = vshrl.u32 %v219_v17, 5  ;;  %v221_v20 = vand.u32 31, %v219_v17  ;;  %vm114_vm3 = vcmp.gt.s32.totalorder %v113_v18, 0 }
  0xd1   :  { %v115_v44 = vsel %vm114_vm3, %v113_v18, 0  ;;  %vm104_vm3 = vcmp.le.f32.partialorder %v103_v11, 0.7853982 }
  0xd2   :  { %v222_v22 = vsub.s32 32, %v221_v20  ;;  %v224_v24 = vshll.u32 %v631_v23, %v221_v20  ;;  %v227_v27 = vshll.u32 %v632_v26, %v221_v20  ;;  %v230_v29 = vshll.u32 %v633_v28, %v221_v20 }
  0xd3   :  { %v233_v31 = vshll.u32 %v634_v30, %v221_v20  ;;  %v236_v33 = vshll.u32 %v635_v32, %v221_v20  ;;  %vm239_vm4 = vcmp.lt.s32.totalorder %v220_v19, 1  ;;  %vm241_vm5 = vcmp.lt.s32.totalorder %v220_v19, 3 }
  0xd4   :  { %v225_v34 = vshrl.u32 %v632_v26, %v222_v22  ;;  %v228_v35 = vshrl.u32 %v633_v28, %v222_v22  ;;  %v231_v36 = vshrl.u32 %v634_v30, %v222_v22  ;;  %v223_v37 = vshrl.u32 %v631_v23, %v222_v22 }
  0xd5   :  { %v234_v38 = vshrl.u32 %v635_v32, %v222_v22  ;;  %v237_v40 = vshrl.u32 %v636_v39, %v222_v22  ;;  %vm242_vm6 = vcmp.lt.s32.totalorder %v220_v19, 4  ;;  %v117_v47 = vand.u32 31, %v115_v44 }
  0xd6   :  { %v226_v41 = vor.u32 %v225_v34, %v224_v24  ;;  %v229_v42 = vor.u32 %v228_v35, %v227_v27  ;;  %v232_v43 = vor.u32 %v231_v36, %v230_v29  ;;  %vm240_vm7 = vcmp.lt.s32.totalorder %v220_v19, 2 }
  0xd7   :  { %v235_v45 = vor.u32 %v234_v38, %v233_v31  ;;  %v238_v46 = vor.u32 %v237_v40, %v236_v33  ;;  %v118_v55 = vsub.s32 32, %v117_v47  ;;  %v116_v62 = vshrl.u32 %v115_v44, 5 }
  0xd8   :  { %v243_v48 = vsel %vm239_vm4, %v223_v37, %v226_v41  ;;  %v244_v49 = vsel %vm242_vm6, %v232_v43, 2102212464  ;;  %v247_v50 = vsel %vm239_vm4, %v226_v41, %v229_v42  ;;  %v251_v51 = vsel %vm239_vm4, %v229_v42, %v232_v43 }
  0xd9   :  { %v245_v52 = vsel %vm241_vm5, %v229_v42, %v244_v49  ;;  %v248_v53 = vsel %vm242_vm6, %v235_v45, 920167782  ;;  %v252_v54 = vsel %vm242_vm6, %v238_v46, 1326507024  ;;  %v120_v5 = vshll.u32 %v631_v23, %v117_v47 }
  0xda   :  { %v249_v56 = vsel %vm241_vm5, %v232_v43, %v248_v53  ;;  %v253_v57 = vsel %vm241_vm5, %v235_v45, %v252_v54  ;;  %v246_v59 = vsel %vm240_vm7, %v243_v48, %v245_v52  ;;  %v121_v7 = vshrl.u32 %v632_v26, %v118_v55 }
  0xdb   :  { %v250_v60 = vsel %vm240_vm7, %v247_v50, %v249_v56  ;;  %v254_v61 = vsel %vm240_vm7, %v251_v51, %v253_v57  ;;  %v123_v8 = vshll.u32 %v632_v26, %v117_v47  ;;  %v124_v9 = vshrl.u32 %v633_v28, %v118_v55 }
  0xdc   :  { %v690_v63 = vmul.u32.u64.low %v678_v21, %v254_v61  ;;  %v691_v0 = vmul.u32.u64.high %v678_v21, %v254_v61, %v690_v63  ;;  %v694_v1 = vmul.u32.u64.low %v678_v21, %v250_v60  ;;  %v695_v2 = vmul.u32.u64.high %v678_v21, %v250_v60, %v694_v1 }
  0xdd   :  { %v126_v10 = vshll.u32 %v633_v28, %v117_v47  ;;  %v127_v12 = vshrl.u32 %v634_v30, %v118_v55  ;;  %v129_v13 = vshll.u32 %v634_v30, %v117_v47  ;;  %v130_v14 = vshrl.u32 %v635_v32, %v118_v55 }
  0xde   :  { %v122_v15 = vor.u32 %v121_v7, %v120_v5  ;;  %v125_v16 = vor.u32 %v124_v9, %v123_v8  ;;  %v132_v17 = vshll.u32 %v635_v32, %v117_v47  ;;  %v133_v18 = vshrl.u32 %v636_v39, %v118_v55 }
  0xdf   :  { %v262_v19 = vmul.u32 %v678_v21, %v246_v59  ;;  %vm264_vm8 = vc.u32 %v691_v0, %v694_v1  ;;  %v265_v20 = vadd.s32 1, %v695_v2  ;;  %v128_v22 = vor.u32 %v127_v12, %v126_v10 }
  0xe0   :  { %v119_v24 = vshrl.u32 %v631_v23, %v118_v55  ;;  %v131_v25 = vor.u32 %v130_v14, %v129_v13  ;;  %v134_v26 = vor.u32 %v133_v18, %v132_v17  ;;  %vm135_vm9 = vcmp.lt.s32.totalorder %v116_v62, 1 }
  0xe1   :  { %v266_v27 = vsel %vm264_vm8, %v265_v20, %v695_v2  ;;  %vm137_vm10 = vcmp.lt.s32.totalorder %v116_v62, 3  ;;  %vm138_vm11 = vcmp.lt.s32.totalorder %v116_v62, 4  ;;  %v143_v28 = vsel %vm135_vm9, %v122_v15, %v125_v16 }
  0xe2   :  { %v267_v29 = vadd.s32 %v266_v27, %v262_v19  ;;  %v140_v30 = vsel %vm138_vm11, %v128_v22, 2102212464  ;;  %v144_v31 = vsel %vm138_vm11, %v131_v25, 920167782  ;;  %v147_v21 = vsel %vm135_vm9, %v125_v16, %v128_v22 }
  0xe3   :  { %vm136_vm12 = vcmp.lt.s32.totalorder %v116_v62, 2  ;;  %v139_v32 = vsel %vm135_vm9, %v119_v24, %v122_v15  ;;  %v145_v33 = vsel %vm137_vm10, %v128_v22, %v144_v31  ;;  %v148_v34 = vsel %vm138_vm11, %v134_v26, 1326507024 }
  0xe4   :  { %v268_v35 = vadd.s32 536870912, %v267_v29  ;;  %v141_v36 = vsel %vm137_vm10, %v125_v16, %v140_v30  ;;  %v146_v37 = vsel %vm136_vm12, %v143_v28, %v145_v33  ;;  %v149_v23 = vsel %vm137_vm10, %v131_v25, %v148_v34 }
  0xe5   :  { %v150_v38 = vsel %vm136_vm12, %v147_v21, %v149_v23  ;;  %v705_v39 = vmul.u32.u64.low %v151_v58, %v146_v37  ;;  %v706_v40 = vmul.u32.u64.high %v151_v58, %v146_v37, %v705_v39  ;;  %v142_v44 = vsel %vm136_vm12, %v139_v32, %v141_v36 }
  0xe6   :  { %v708_v41 = vshrl.u32 %v268_v35, 30  ;;  %v710_v42 = vmul.u32.u64.low %v151_v58, %v150_v38  ;;  %v711_v43 = vmul.u32.u64.high %v151_v58, %v150_v38, %v710_v42  ;;  %v158_v48 = vmul.u32 %v151_v58, %v142_v44 }
  0xe7   :  { %v161_v46 = vadd.s32 1, %v706_v40  ;;  %v263_v61 = vadd.s32 %v694_v1, %v691_v0 }
  0xe8   :  { %v270_v45 = vshll.u32 %v708_v41, 30  ;;  %vm160_vm13 = vc.u32 %v711_v43, %v705_v39  ;;  %v159_v19 = vadd.s32 %v705_v39, %v711_v43  ;;  %v293_v34 = vsub.s32 4, %v708_v41 }
  0xe9   :  { %v162_v49 = vsel %vm160_vm13, %v161_v46, %v706_v40 }
  0xea   :  { %v271_v47 = vsub.s32 %v267_v29, %v270_v45  ;;  %v163_v51 = vadd.s32 %v162_v49, %v158_v48  ;;  %v294_v37 = vsel %vm209_vm0, %v293_v34, %v708_v41 }
  0xeb   :  { %v296_v39 = vsel %vm725_vm1, 0, %v294_v37 }
  0xec   :  { %v273_v50 = vsub.s32 0, %v271_v47  ;;  %v164_v53 = vadd.s32 536870912, %v163_v51  ;;  %v300_v42 = vadd.s32 3, %v296_v39  ;;  %v518_v44 = vand.u32 3, %v296_v39 }
  0xee   :  { %v563_v52 = vmin.u32 %v273_v50, %v271_v47  ;;  %v165_v55 = vshrl.u32 %v164_v53, 30  ;;  %v301_v46 = vand.u32 3, %v300_v42  ;;  %vm520_vm4 = vcmp.eq.s32.totalorder %v518_v44, 0 }
  0xef   :  { %vm523_vm5 = vcmp.eq.s32.totalorder %v518_v44, 2 }
  0xf0   :  { %v275_v54 = vclz %v563_v52  ;;  %v166_v57 = vshll.u32 %v165_v55, 30  ;;  %v189_v36 = vsub.s32 4, %v165_v55  ;;  %vm303_vm6 = vcmp.eq.s32.totalorder %v301_v46, 0 }
  0xf1   :  { %vm306_vm7 = vcmp.eq.s32.totalorder %v301_v46, 2 }
  0xf2   :  { %v564_v56 = vadd.s32 4294967294, %v275_v54  ;;  %v167_v59 = vsub.s32 %v163_v51, %v166_v57  ;;  %v190_v38 = vsel %vm105_vm2, %v189_v36, %v165_v55 }
  0xf3   :  { %v192_v40 = vsel %vm104_vm3, 0, %v190_v38 }
  0xf4   :  { %vm565_vm14 = vcmp.lt.s32.totalorder %v564_v56, 0  ;;  %v169_v63 = vsub.s32 0, %v167_v59  ;;  %v196_v43 = vadd.s32 3, %v192_v40 }
  0xf5   :  { %v278_v60 = vsel %vm565_vm14, 0, %v564_v56  ;;  %vm195_vm14 = vweird.f32 %v670_v6 }
  0xf6   :  { %v279_v62 = vsub.s32 32, %v278_v60  ;;  %v283_v58 = vsub.s32 4294967266, %v278_v60  ;;  %v280_v2 = vshll.u32 %v271_v47, %v278_v60  ;;  %v559_v8 = vmin.u32 %v169_v63, %v167_v59 }
  0xf7   :  { %v415_v47 = vand.u32 3, %v192_v40  ;;  %v197_v48 = vand.u32 3, %v196_v43 }
  0xf8   :  { %v281_v5 = vshrl.u32 %v263_v61, %v279_v62  ;;  %v284_v7 = vadd.s32 127, %v283_v58  ;;  %v171_v12 = vclz %v559_v8 }
  0xf9   :  { %vm416_vm8 = vcmp.lt.s32.totalorder %v415_v47, 2  ;;  %vm417_vm9 = vcmp.eq.s32.totalorder %v415_v47, 0  ;;  %vm420_vm10 = vcmp.eq.s32.totalorder %v415_v47, 2  ;;  %vm198_vm11 = vcmp.lt.s32.totalorder %v197_v48, 2 }
  0xfa   :  { %v282_v9 = vor.u32 %v281_v5, %v280_v2  ;;  %v285_v10 = vshll.u32 %v284_v7, 23  ;;  %v560_v14 = vadd.s32 4294967294, %v171_v12  ;;  %vm199_vm12 = vcmp.eq.s32.totalorder %v197_v48, 0 }
  0xfb   :  { %vm202_vm13 = vcmp.eq.s32.totalorder %v197_v48, 2 }
  0xfc   :  { %v286_v13 = vor.u32 4788187, %v285_v10  ;;  %v289_v16 = vcvt.s32.f32 %v282_v9  ;;  %vm561_vm15 = vcmp.lt.s32.totalorder %v560_v14, 0 }
  0xfd   :  { %v174_v17 = vsel %vm561_vm15, 0, %v560_v14  ;;  %vm519_vm15 = vcmp.lt.s32.totalorder %v518_v44, 2 }
  0xfe   :  { %v287_v15 = vand.u32 2147483647, %v286_v13  ;;  %v175_v0 = vsub.s32 32, %v174_v17  ;;  %v179_v1 = vsub.s32 4294967266, %v174_v17  ;;  %v176_v22 = vshll.u32 %v167_v59, %v174_v17 }
 0x100   :  { %v290_v18 = vmul.f32 %v289_v16, %v287_v15  ;;  %v177_v24 = vshrl.u32 %v159_v19, %v175_v0  ;;  %v180_v25 = vadd.s32 127, %v179_v1 }
 0x102   :  { %v291_v20 = vxor.u32 2147483648, %v290_v18  ;;  %v178_v26 = vor.u32 %v177_v24, %v176_v22  ;;  %v181_v27 = vshll.u32 %v180_v25, 23 }
 0x104   :  { %v292_v28 = vsel %vm209_vm0, %v291_v20, %v290_v18  ;;  %v182_v29 = vor.u32 4788187, %v181_v27  ;;  %v185_v21 = vcvt.s32.f32 %v178_v26  ;;  %vm302_vm0 = vcmp.lt.s32.totalorder %v301_v46, 2 }
 0x105   :  { %v295_v32 = vsel %vm725_vm1, %v666_v3, %v292_v28  ;;  %vm299_vm1 = vweird.f32 %v666_v3 }
 0x106   :  { %v183_v31 = vand.u32 2147483647, %v182_v29  ;;  %601 = vcosq.f32 %v295_v32 }
 0x107   :  { %603 = vsinq.f32 %v295_v32 }
 0x108   :  { %v186_v33 = vmul.f32 %v185_v21, %v183_v31 }
 0x10a   :  { %v187_v35 = vxor.u32 2147483648, %v186_v33 }
 0x10c   :  { %v188_v4 = vsel %vm105_vm2, %v187_v35, %v186_v33  ;;  %vm319_vm2 = vcmask 285720  }
 0x10d   :  { %v191_v23 = vsel %vm104_vm3, %v670_v6, %v188_v4  ;;  %vm536_vm3 = vcmask 548120  }
 0x10e   :  { %605 = vcosq.f32 %v191_v23 }
 0x10f   :  { %607 = vsinq.f32 %v191_v23 }
 0x113   :  { %v602_v45 = vpop.eup %601 }
 0x114   :  { %v604_v11 = vpop.eup %603  ;;  %v307_v49 = vxor.u32 2147483648, %v602_v45 }
 0x115   :  { %v304_v50 = vxor.u32 2147483648, %v604_v11 }
 0x116   :  { %v525_v56 = vsel %vm523_vm5, %v307_v49, %v604_v11  ;;  %v308_v57 = vsel %vm306_vm7, %v307_v49, %v604_v11 }
 0x117   :  { %v522_v61 = vsel %vm520_vm4, %v602_v45, %v304_v50  ;;  %v305_v62 = vsel %vm303_vm6, %v602_v45, %v304_v50 }
 0x118   :  { %v526_v7 = vsel %vm519_vm15, %v522_v61, %v525_v56  ;;  %v309_v8 = vsel %vm302_vm0, %v305_v62, %v308_v57 }
 0x119   :  { %v527_v9 = vsel %vm299_vm1, nan, %v526_v7  ;;  %v310_v10 = vsel %vm299_vm1, nan, %v309_v8 }
 0x11b   :  { %v606_v41 = vpop.eup %605 }
 0x11c   :  { %v608_v51 = vpop.eup %607  ;;  %v203_v52 = vxor.u32 2147483648, %v606_v41 }
 0x11d   :  { %v200_v53 = vxor.u32 2147483648, %v608_v51 }
 0x11e   :  { %v422_v54 = vsel %vm420_vm10, %v203_v52, %v608_v51  ;;  %v204_v55 = vsel %vm202_vm13, %v203_v52, %v608_v51 }
 0x11f   :  { %v419_v59 = vsel %vm417_vm9, %v606_v41, %v200_v53  ;;  %v201_v60 = vsel %vm199_vm12, %v606_v41, %v200_v53 }
 0x120   :  { %v423_v58 = vsel %vm416_vm8, %v419_v59, %v422_v54  ;;  %v205_v63 = vsel %vm198_vm11, %v201_v60, %v204_v55 }
 0x121   :  { %v424_v2 = vsel %vm195_vm14, nan, %v423_v58  ;;  %v206_v5 = vsel %vm195_vm14, nan, %v205_v63 }
 0x122   :  { %530 = vrot.lane.b32.xlu1 %v424_v2, %s637_s0  ;;  %313 = vrot.lane.b32.xlu0 %v206_v5, %s638_s1 }
 0x126   :  { %532 = vrot.lane.b32.xlu1 %v527_v9, %s637_s0  ;;  %315 = vrot.lane.b32.xlu0 %v310_v10, %s638_s1 }
 0x194   :  { %v531_v6 = vpop.permute.xlu1 %530  ;;  %v314_v12 = vpop.permute.xlu0 %313 }
 0x195   :  { %320 = vst.msk [vmem:[#allocation2] sm:$0xff] %vm319_vm2, %v314_v12 }
 0x196   :  { %537 = vst.msk [vmem:[#allocation2] sm:$0xff] %vm536_vm3, %v531_v6 }
 0x198   :  { %v533_v13 = vpop.permute.xlu1 %532  ;;  %v316_v14 = vpop.permute.xlu0 %315 }
 0x199   :  { %321 = vst.msk [vmem:[#allocation2 + $0x8] sm:$0xff] %vm319_vm2, %v316_v14 }
 0x19a   :  { %538 = vst.msk [vmem:[#allocation2 + $0x8] sm:$0xff] %vm536_vm3, %v533_v13 }
 0x19b   :  { %620 = shalt.err (!%p617_p4)
}
 0x19c   :  { %s640_s18 = smov 128   ;;  %s641_s19 = smov 8  }
 0x19d   :  { %550 = dma.vmem_to_hbm [thread:$0]  %s545_s16, 256, %s752_s2, [#allocation3], %s640_s18, %s640_s18, %s641_s19  }
 0x19e   :  { %629 = dma.done.wait [#allocation3], 256  }
 0x19f   :  { %630 = vsyncadd [#allocation3], 4294967040 }
 0x1a0   :  { %554 = vsyncpa [#allocation3], 1 }

</bundles_post_ra>
